<compile_context>
chip_gen: v7x
topology: tpu7x:2x2x1
jax: 0.10.0
libtpu: 0.0.40
codegen_flags: <defaults>
</compile_context>

<pallas_src>
import functools

import jax
import jax.numpy as jnp
from jax.experimental import pallas as pl
from jax.experimental.pallas import tpu as pltpu


def _mixup_ce_kernel(lam_ref, pred_ref, tgt_ref, out_ref, acc_ref, *,
                     n_total, reduction):
    i = pl.program_id(0)

    @pl.when(i == 0)
    def _():
        acc_ref[...] = jnp.zeros_like(acc_ref)

    logits = pred_ref[...].astype(jnp.float32)                  # (TM, C)
    tm, c = logits.shape
    lam = lam_ref[0]

    # Mask padded tail rows (the last tile may read past the end of pred).
    row_ids = i * tm + jax.lax.broadcasted_iota(jnp.int32, (tm, 1), 0)
    valid = row_ids < n_total                                   # (TM, 1) bool
    logits = jnp.where(valid, logits, 0.0)

    # Numerically-stable log-sum-exp over the class (lane) axis.
    m = jnp.max(logits, axis=-1, keepdims=True)                 # (TM, 1)
    lse = jnp.log(jnp.sum(jnp.exp(logits - m), axis=-1, keepdims=True)) + m

    # Fused lam-weighted one-hot gather (2 compares + 2 selects folded into one
    # multiply-accumulate and a single cross-lane reduction).
    class_ids = jax.lax.broadcasted_iota(jnp.int32, (tm, c), 1)  # (TM, C)
    ta = tgt_ref[:, 0:1]                                         # (TM, 1) int32
    tb = tgt_ref[:, 1:2]                                         # (TM, 1) int32
    w = (jnp.where(class_ids == ta, lam, 0.0)
         + jnp.where(class_ids == tb, 1.0 - lam, 0.0))           # (TM, C)
    mixed_logit = jnp.sum(w * logits, axis=-1, keepdims=True)    # (TM, 1)

    per_sample = jnp.where(valid, lse - mixed_logit, 0.0)        # (TM, 1)
    acc_ref[...] = acc_ref[...] + jnp.sum(per_sample, keepdims=True)

    @pl.when(i == pl.num_programs(0) - 1)
    def _():
        scale = (1.0 / n_total) if reduction == "mean" else 1.0
        out_ref[...] = acc_ref[...] * scale


def _round_up(x, m):
    return (x + m - 1) // m * m


def _choose_tm(n, c, tm):
    if tm is not None:
        return max(8, _round_up(int(tm), 8))
    # Keep the f32 working tile around <= 2 MiB so the double-buffered input
    # plus f32 temporaries stay well under the scoped-VMEM default on every
    # generation (v5e/v6e: 128 MiB physical, v7x: 64 MiB).
    budget_bytes = 2 * 1024 * 1024
    rows = max(8, (budget_bytes // max(1, c * 4)) // 8 * 8)
    return int(min(512, rows, _round_up(n, 8)))


def mixup_cross_entropy_loss(pred, targets_a, targets_b, lam,
                             reduction="mean", tm=None):
    """lam * CE(pred, targets_a) + (1 - lam) * CE(pred, targets_b)."""
    if reduction not in ("mean", "sum"):
        # TODO(synk): reduction='none' (per-sample vector output) not wired up.
        raise NotImplementedError(reduction)

    n, c = pred.shape
    # Pack both target vectors into one (N, 2) int32 array.
    targets = jnp.stack(
        [targets_a.astype(jnp.int32), targets_b.astype(jnp.int32)], axis=1)
    lam_arr = jnp.asarray(lam, jnp.float32).reshape(1)

    tm = _choose_tm(n, c, tm)
    num_tiles = pl.cdiv(n, tm)

    kernel = functools.partial(_mixup_ce_kernel, n_total=n, reduction=reduction)

    cost = pl.CostEstimate(
        flops=8 * n * c,
        transcendentals=n * c,
        bytes_accessed=int(pred.size) * pred.dtype.itemsize + int(targets.size) * 4 + 8,
    )

    # TODO(synk): for vocabulary-scale C (>32K) add a second "arbitrary" grid
    # axis over classes with an online-LSE accumulator; for v7x's 2 TCs emit
    # per-tile partial sums and mark the batch axis "parallel".
    out = pl.pallas_call(
        kernel,
        out_shape=jax.ShapeDtypeStruct((1, 1), jnp.float32),
        grid_spec=pltpu.PrefetchScalarGridSpec(
            num_scalar_prefetch=1,                              # lam -> SMEM
            grid=(num_tiles,),
            in_specs=[
                pl.BlockSpec((tm, c), lambda i, lam: (i, 0)),   # pred tile
                pl.BlockSpec((tm, 2), lambda i, lam: (i, 0)),   # packed targets
            ],
            out_specs=pl.BlockSpec((1, 1), lambda i, lam: (0, 0)),
            scratch_shapes=[pltpu.VMEM((1, 1), jnp.float32)],   # running sum
        ),
        compiler_params=pltpu.CompilerParams(
            dimension_semantics=("arbitrary",)),                # batch carries a reduction
        cost_estimate=cost,
    )(lam_arr, pred, targets)
    return out[0, 0]


def _reference(pred, targets_a, targets_b, lam, reduction="mean"):
    logp = jax.nn.log_softmax(pred.astype(jnp.float32), axis=-1)
    nll_a = -jnp.take_along_axis(logp, targets_a[:, None], axis=-1)[:, 0]
    nll_b = -jnp.take_along_axis(logp, targets_b[:, None], axis=-1)[:, 0]
    if reduction == "mean":
        ce_a, ce_b = jnp.mean(nll_a), jnp.mean(nll_b)
    else:
        ce_a, ce_b = jnp.sum(nll_a), jnp.sum(nll_b)
    return lam * ce_a + (1.0 - lam) * ce_b


if __name__ == "__main__":
    key = jax.random.PRNGKey(0)
    k1, k2, k3 = jax.random.split(key, 3)

    N, C = 20, 128  # N not a multiple of the tile to exercise tail masking
    pred = jax.random.normal(k1, (N, C), dtype=jnp.float32)
    targets_a = jax.random.randint(k2, (N,), 0, C, dtype=jnp.int32)
    targets_b = jax.random.randint(k3, (N,), 0, C, dtype=jnp.int32)
    lam = 0.7

    # Multi-tile path (grid of 3 tiles of 8 rows, last tile partially valid).
    loss_tiled = mixup_cross_entropy_loss(pred, targets_a, targets_b, lam, tm=8)
    # Auto tile size (single tile here).
    loss_auto = mixup_cross_entropy_loss(pred, targets_a, targets_b, lam)
    # 'sum' reduction.
    loss_sum = mixup_cross_entropy_loss(pred, targets_a, targets_b, lam,
                                        reduction="sum", tm=8)
    jax.block_until_ready((loss_tiled, loss_auto, loss_sum))

    ref_mean = _reference(pred, targets_a, targets_b, lam, "mean")
    ref_sum = _reference(pred, targets_a, targets_b, lam, "sum")
    assert jnp.allclose(loss_tiled, ref_mean, rtol=1e-5, atol=1e-5), (loss_tiled, ref_mean)
    assert jnp.allclose(loss_auto, ref_mean, rtol=1e-5, atol=1e-5), (loss_auto, ref_mean)
    assert jnp.allclose(loss_sum, ref_sum, rtol=1e-5, atol=1e-4), (loss_sum, ref_sum)

    # bf16 logits go straight into the kernel (upcast happens in-kernel on the
    # VMEM tile; no f32 copy of pred in HBM).
    pred_bf16 = pred.astype(jnp.bfloat16)
    loss_bf16 = mixup_cross_entropy_loss(pred_bf16, targets_a, targets_b, lam, tm=8)
    ref_bf16 = _reference(pred_bf16, targets_a, targets_b, lam, "mean")
    jax.block_until_ready(loss_bf16)
    assert jnp.allclose(loss_bf16, ref_bf16, rtol=1e-4, atol=1e-4), (loss_bf16, ref_bf16)

    print("KERNEL_OK")
</pallas_src>

<mosaic_0001>
module attributes {stable_mosaic.version = 11 : i64} {
  func.func @_mixup_ce_kernel(%arg0: i32, %arg1: memref<1xf32, #tpu.memory_space<smem>>, %arg2: memref<8x128xf32, #tpu.memory_space<vmem>>, %arg3: memref<8x2xi32, #tpu.memory_space<vmem>>, %arg4: memref<1x1xf32, #tpu.memory_space<vmem>>, %arg5: memref<1x1xf32, #tpu.memory_space<vmem>>) attributes {dimension_semantics = [#tpu.dimension_semantics<arbitrary>], iteration_bounds = array<i64: 3>, scalar_prefetch = 1 : i64, scratch_operands = 1 : i64, tpu.core_type = #tpu.core_type<tc>, window_params = [{transform_indices = @transform_0, window_bounds = array<i64: 8, 128>}, {transform_indices = @transform_1, window_bounds = array<i64: 8, 2>}, {pipeline_mode = #tpu.pipeline_mode<synchronous>, transform_indices = @transform_2, window_bounds = array<i64: 1, 1>}]} {
    %c0_i32 = arith.constant 0 : i32
    %0 = arith.cmpi eq, %arg0, %c0_i32 : i32
    %1 = arith.extui %0 : i1 to i32
    %c0_i32_0 = arith.constant 0 : i32
    %2 = arith.cmpi ne, %1, %c0_i32_0 : i32
    scf.if %2 {
      %cst_19 = arith.constant 0.000000e+00 : f32
      %56 = vector.broadcast %cst_19 : f32 to vector<1x1xf32>
      %c0_20 = arith.constant 0 : index
      %c0_21 = arith.constant 0 : index
      %57 = vector.load %arg5[%c0_20, %c0_21] : memref<1x1xf32, #tpu.memory_space<vmem>>, vector<1x1xf32>
      tpu.vector_store %arg5[%c0_20, %c0_21], %56 {strides = array<i32>} : memref<1x1xf32, #tpu.memory_space<vmem>>, vector<1x1xf32>,
    } else {
    }
    %c0 = arith.constant 0 : index
    %c0_1 = arith.constant 0 : index
    %3 = vector.load %arg2[%c0, %c0_1] : memref<8x128xf32, #tpu.memory_space<vmem>>, vector<8x128xf32>
    %c0_2 = arith.constant 0 : index
    %4 = memref.load %arg1[%c0_2] : memref<1xf32, #tpu.memory_space<smem>>
    %c8_i32 = arith.constant 8 : i32
    %5 = arith.muli %arg0, %c8_i32 : i32
    %6 = tpu.iota {dimensions = array<i32: 0>} : vector<8x1xi32>
    %7 = vector.broadcast %5 : i32 to vector<8x1xi32>
    %8 = arith.addi %7, %6 : vector<8x1xi32>
    %c20_i32 = arith.constant 20 : i32
    %9 = vector.broadcast %c20_i32 : i32 to vector<8x1xi32>
    %10 = arith.cmpi slt, %8, %9 : vector<8x1xi32>
    %cst = arith.constant 0.000000e+00 : f32
    %11 = vector.shape_cast %10 : vector<8x1xi1> to vector<8x1xi1>
    %12 = vector.broadcast %11 : vector<8x1xi1> to vector<8x128xi1>
    %13 = vector.broadcast %cst : f32 to vector<8x128xf32>
    %14 = arith.select %12, %3, %13 : vector<8x128xi1>, vector<8x128xf32>
    %cst_3 = arith.constant dense<0xFF800000> : vector<8xf32>
    %15 = vector.multi_reduction <maximumf>, %14, %cst_3 [1] : vector<8x128xf32> to vector<8xf32>
    %16 = vector.shape_cast %15 : vector<8xf32> to vector<8x1xf32>
    %17 = vector.broadcast %16 : vector<8x1xf32> to vector<8x128xf32>
    %18 = arith.subf %14, %17 : vector<8x128xf32>
    %19 = math.exp %18 : vector<8x128xf32>
    %cst_4 = arith.constant dense<0.000000e+00> : vector<8xf32>
    %20 = vector.multi_reduction <add>, %19, %cst_4 [1] : vector<8x128xf32> to vector<8xf32>
    %21 = vector.shape_cast %20 : vector<8xf32> to vector<8x1xf32>
    %22 = math.log %21 : vector<8x1xf32>
    %23 = arith.addf %22, %16 : vector<8x1xf32>
    %24 = tpu.iota {dimensions = array<i32: 1>} : vector<8x128xi32>
    %c0_5 = arith.constant 0 : index
    %c0_6 = arith.constant 0 : index
    %25 = vector.load %arg3[%c0_5, %c0_6] : memref<8x2xi32, #tpu.memory_space<vmem>>, vector<8x1xi32>
    %c0_7 = arith.constant 0 : index
    %c1 = arith.constant 1 : index
    %26 = vector.load %arg3[%c0_7, %c1] : memref<8x2xi32, #tpu.memory_space<vmem>>, vector<8x1xi32>
    %27 = vector.broadcast %25 : vector<8x1xi32> to vector<8x128xi32>
    %28 = arith.cmpi eq, %24, %27 : vector<8x128xi32>
    %cst_8 = arith.constant 0.000000e+00 : f32
    %29 = vector.broadcast %4 : f32 to vector<8x128xf32>
    %30 = vector.broadcast %cst_8 : f32 to vector<8x128xf32>
    %31 = arith.select %28, %29, %30 : vector<8x128xi1>, vector<8x128xf32>
    %32 = vector.broadcast %26 : vector<8x1xi32> to vector<8x128xi32>
    %33 = arith.cmpi eq, %24, %32 : vector<8x128xi32>
    %cst_9 = arith.constant 1.000000e+00 : f32
    %34 = arith.subf %cst_9, %4 : f32
    %cst_10 = arith.constant 0.000000e+00 : f32
    %35 = vector.broadcast %34 : f32 to vector<8x128xf32>
    %36 = vector.broadcast %cst_10 : f32 to vector<8x128xf32>
    %37 = arith.select %33, %35, %36 : vector<8x128xi1>, vector<8x128xf32>
    %38 = arith.addf %31, %37 : vector<8x128xf32>
    %39 = arith.mulf %38, %14 : vector<8x128xf32>
    %cst_11 = arith.constant dense<0.000000e+00> : vector<8xf32>
    %40 = vector.multi_reduction <add>, %39, %cst_11 [1] : vector<8x128xf32> to vector<8xf32>
    %41 = vector.shape_cast %40 : vector<8xf32> to vector<8x1xf32>
    %42 = arith.subf %23, %41 : vector<8x1xf32>
    %cst_12 = arith.constant 0.000000e+00 : f32
    %43 = vector.broadcast %cst_12 : f32 to vector<8x1xf32>
    %44 = arith.select %10, %42, %43 : vector<8x1xi1>, vector<8x1xf32>
    %c0_13 = arith.constant 0 : index
    %c0_14 = arith.constant 0 : index
    %45 = vector.load %arg5[%c0_13, %c0_14] : memref<1x1xf32, #tpu.memory_space<vmem>>, vector<1x1xf32>
    %46 = vector.shape_cast %44 : vector<8x1xf32> to vector<1x8x1xf32>
    %cst_15 = arith.constant dense<0.000000e+00> : vector<1xf32>
    %47 = vector.multi_reduction <add>, %46, %cst_15 [1, 2] : vector<1x8x1xf32> to vector<1xf32>
    %48 = vector.shape_cast %47 : vector<1xf32> to vector<1x1x1xf32>
    %49 = vector.extract %48[0, 0, 0] : f32 from vector<1x1x1xf32>
    %50 = vector.broadcast %49 : f32 to vector<1x1xf32>
    %51 = arith.addf %45, %50 : vector<1x1xf32>
    %c0_16 = arith.constant 0 : index
    %c0_17 = arith.constant 0 : index
    %52 = vector.load %arg5[%c0_16, %c0_17] : memref<1x1xf32, #tpu.memory_space<vmem>>, vector<1x1xf32>
    tpu.vector_store %arg5[%c0_16, %c0_17], %51 {strides = array<i32>} : memref<1x1xf32, #tpu.memory_space<vmem>>, vector<1x1xf32>,
    %c2_i32 = arith.constant 2 : i32
    %53 = arith.cmpi eq, %arg0, %c2_i32 : i32
    %54 = arith.extui %53 : i1 to i32
    %c0_i32_18 = arith.constant 0 : i32
    %55 = arith.cmpi ne, %54, %c0_i32_18 : i32
    scf.if %55 {
      %c0_19 = arith.constant 0 : index
      %c0_20 = arith.constant 0 : index
      %56 = vector.load %arg5[%c0_19, %c0_20] : memref<1x1xf32, #tpu.memory_space<vmem>>, vector<1x1xf32>
      %cst_21 = arith.constant 5.000000e-02 : f32
      %57 = vector.broadcast %cst_21 : f32 to vector<1x1xf32>
      %58 = arith.mulf %56, %57 : vector<1x1xf32>
      %c0_22 = arith.constant 0 : index
      %c0_23 = arith.constant 0 : index
      %59 = vector.load %arg4[%c0_22, %c0_23] : memref<1x1xf32, #tpu.memory_space<vmem>>, vector<1x1xf32>
      tpu.vector_store %arg4[%c0_22, %c0_23], %58 {strides = array<i32>} : memref<1x1xf32, #tpu.memory_space<vmem>>, vector<1x1xf32>,
    } else {
    }
    return
  }
  func.func @transform_0(%arg0: i32, %arg1: memref<1xf32, #tpu.memory_space<smem>>) -> (i32, i32) {
    %c0_i32 = arith.constant 0 : i32
    %c0_i32_0 = arith.constant 0 : i32
    return %arg0, %c0_i32 : i32, i32
  }
  func.func @transform_1(%arg0: i32, %arg1: memref<1xf32, #tpu.memory_space<smem>>) -> (i32, i32) {
    %c0_i32 = arith.constant 0 : i32
    %c0_i32_0 = arith.constant 0 : i32
    return %arg0, %c0_i32 : i32, i32
  }
  func.func @transform_2(%arg0: i32, %arg1: memref<1xf32, #tpu.memory_space<smem>>) -> (i32, i32) {
    %c0_i32 = arith.constant 0 : i32
    %c0_i32_0 = arith.constant 0 : i32
    %c0_i32_1 = arith.constant 0 : i32
    return %c0_i32, %c0_i32_0 : i32, i32
  }
}

</mosaic_0001>

<bundles_post_ra>
// kernel: tpu_custom_call.1
= control target key start
LH: loop header
LB: loop body
LE: loop exit
PB: predicated region body
PF: predicated region fallthrough
CT: control target
= control target key end

     0   :  { %s430_s0 = inlined_call_operand.<no memory space> [shape: f32[1], index: 0, kind: input, shape index: {}]   ;;  %s431_s1 = inlined_call_operand.vmem [shape: f32[20,128], index: 1, kind: input, shape index: {}]   ;;  %s432_s2 = inlined_call_operand.vmem [shape: s32[20,2], index: 2, kind: input, shape index: {}]   ;;  %s433_s3 = inlined_call_operand.hbm [shape: f32[1,1], index: 3, kind: output, shape index: {}]  }
   0x1   :  { %8 = sst [smem:[#allocation4]] %s430_s0 }
   0x2   :  { %9 = vsyncpa [#allocation6], 0  ;;  %s381_s14 = smov 0  }
   0x3 LB: > { %s387_s15 = sadd.s32 4294967295, %s352_s14   ;;  %p279_p0 = scmp.ge.s32.totalorder %s352_s14, 1  ;;  %s352_s14 = sphi %s381_s14, %s15_s14  }
   0x4   : > { %p118_p1 = scmp.lt.s32.totalorder %s352_s14, 4 }
   0x6   : > { %p119_p2 = pnand %p279_p0, %p118_p1 }
   0x7   : > { %p138_p3 = scmp.lt.s32.totalorder (!%p119_p2), %s387_s15, 2  ;;  %p282_p4 = scmp.ne.s32.totalorder (!%p119_p2), %s387_s15, 0 }
   0x8   : > { %122 = sbr.rel (%p119_p2) target bundleno = 592 (0x250), region = 28 }
   0xf   : > { %s139_s0 = scalar_select %p138_p3, %s387_s15, 2 }
  0x10   : > { %149 = sbr.rel (%p282_p4) target bundleno = 23 (0x17), region = 32  ;;  %vm150_vm0 = vcmask (!%p282_p4), 0   ;;  %v354_v0 = vmov (!%p282_p4), 0.0  }
  0x11   : > { %s280_s16 = sshll.u32 %s139_s0, 3  ;;  %151 = vst.msk [vmem:[#allocation2] sm:$0x1] (!%p282_p4), %vm150_vm0, %v354_v0 }
  0x12   : > { %s141_s19 = scalar_lea.vmem %s431_s1, %s280_s16  ;;  %s145_s22 = scalar_lea.vmem %s432_s2, %s280_s16 }
  0x17 PF: > { %s283_s23 = sshll.u32 %s387_s15, 3  ;;  %v155_v1 = vlaneseq  ;;  %v175_v2 = vld [vmem:[%s145_s22] sm:$0xff]  ;;  %v355_v4 = vmov 1   ;;  %v356_v5 = vmov 0   ;;  %s153_s24 = sld [smem:[#allocation4]]  ;;  %vm196_vm4 = vcmask 7168  }
  0x18   : > { %v157_v3 = vstv %s283_s23  ;;  %310 = vset.pattern.permute.xlu1 %v355_v4  ;;  %309 = vset.pattern.permute.xlu0 %v356_v5  ;;  %v152_v7 = vld [vmem:[%s141_s19] sm:$0xff]  ;;  %vm209_vm5 = vcmask 0   ;;  %p284_p5 = scmp.ne.s32.totalorder %s387_s15, 2 }
  0x19   : > { %v156_v6 = vshrl.u32 %v155_v1, 7  ;;  %183 = vperm.xlu1 %310, %v175_v2   ;;  %v174_v12 = vand.u32 127, %v155_v1  ;;  %v195_v38 = vld [vmem:[#allocation2] sm:$0x1] }
  0x1b   : > { %v158_v8 = vadd.s32 %v157_v3, %v156_v6 }
  0x1d   : > { %vm159_vm1 = vcmp.lt.s32.totalorder %v158_v8, 20  ;;  %s186_s25 = ssub.f32 1.0, %s153_s24  ;;  %v180_v16 = vstv %s153_s24 }
  0x1e   : > { %v162_v9 = vsel %vm159_vm1, %v152_v7, 0.0 }
  0x1f   : > { %163 = vmax.xlane.f32.xlu0 %v162_v9  ;;  %v187_v15 = vstv %s186_s25 }
  0x35   : > { %177 = vperm.xlu0 %309, %v175_v2  }
  0x39   : > { %311 = vset.pattern.permute.xlu0 %v355_v4 }
  0x98   : > { %v184_v14 = vpop.permute.xlu1 %183 }
  0x99   : > { %vm185_vm2 = vcmp.eq.s32.totalorder %v174_v12, %v184_v14 }
  0x9a   : > { %v188_v18 = vsel %vm185_vm2, %v187_v15, 0.0 }
  0xac   : > { %v164_v10 = vpop.xlane.xlu0 %163 }
  0xad   : > { %v165_v11 = vsub.f32 %v162_v9, %v164_v10 }
  0xaf   : > { %v166_v13 = vmul.f32 1.442695, %v165_v11 }
  0xb1   : > { %312 = vpow2.f32 %v166_v13 }
  0xb4   : > { %v178_v17 = vpop.permute.xlu0 %177 }
  0xb5   : > { %vm179_vm3 = vcmp.eq.s32.totalorder %v174_v12, %v178_v17 }
  0xb6   : > { %v181_v19 = vsel %vm179_vm3, %v180_v16, 0.0 }
  0xb7   : > { %v189_v20 = vadd.f32 %v188_v18, %v181_v19 }
  0xb9   : > { %v190_v22 = vmul.f32 %v189_v20, %v162_v9 }
  0xbb   : > { %v313_v21 = vpop.eup %312 }
  0xbc   : > { %168 = vadd.xlane.f32.xlu1 %v313_v21 }
  0xc0   : > { %191 = vadd.xlane.f32.xlu1 %v190_v22 }
 0x149   : > { %v169_v23 = vpop.xlane.xlu1 %168 }
 0x14a   : > { %314 = vlog2.f32 %v169_v23 }
 0x14d   : > { %v192_v26 = vpop.xlane.xlu1 %191 }
 0x154   : > { %v315_v24 = vpop.eup %314 }
 0x155   : > { %v171_v25 = vmul.f32 0.6931472, %v315_v24 }
 0x157   : > { %v172_v27 = vadd.f32 %v171_v25, %v164_v10 }
 0x159   : > { %v193_v28 = vsub.f32 %v172_v27, %v192_v26 }
 0x15b   : > { %v194_v29 = vsel %vm159_vm1, %v193_v28, 0.0 }
 0x15c   : > { %v197_v30 = vsel %vm196_vm4, %v194_v29, 0.0 }
 0x15d   : > { %198 = vadd.xlane.f32.xlu1 %v197_v30 }
 0x1ea   : > { %v199_v31 = vpop.xlane.xlu1 %198 }
 0x1eb   : > { %v200_v32 = vrot.slane %v199_v31, 4 }
 0x1ed   : > { %v201_v33 = vadd.f32 %v200_v32, %v199_v31 }
 0x1ef   : > { %v202_v34 = vrot.slane %v201_v33, 2 }
 0x1f1   : > { %v203_v35 = vadd.f32 %v202_v34, %v201_v33 }
 0x1f3   : > { %v204_v36 = vrot.slane %v203_v35, 1 }
 0x1f5   : > { %v205_v37 = vadd.f32 %v204_v36, %v203_v35 }
 0x1f7   : > { %289 = vpush %v205_v37 }
 0x226   : > { %214 = sbr.rel (%p284_p5) target bundleno = 567 (0x237), region = 36 }
 0x228   : > { %s290_s26 = spop %289 }
 0x229   : > { %v207_v39 = vstv %s290_s26 }
 0x22a   : > { %v208_v40 = vadd.f32 %v207_v39, %v195_v38 }
 0x22c   : > { %210 = vst.msk [vmem:[#allocation2] sm:$0x1] %vm209_vm5, %v208_v40 }
 0x233   : > { %v215_v41 = vld [vmem:[#allocation2] sm:$0x1] }
 0x234   : > { %v216_v42 = vmul.f32 0.05, %v215_v41 }
 0x236   : > { %217 = vst.msk [vmem:[#allocation5] sm:$0x1] %vm209_vm5, %v216_v42 }
 0x237 PF: > { %p295_p6 = scmp.eq.s32.totalorder %s387_s15, 2  ;;  %s357_s27 = smov [#allocation5]  }
 0x238   : > { %s225_s28 = sshll.u32 %s357_s27, 4  ;;  %s226_s28 = int_to_ptr.vmem [resolvable:$true] %s225_s28 }
 0x239   : > { %s316_s29 = scalar_lea.vmem %s226_s28, 16  ;;  %s322_s30 = scalar_lea.vmem %s226_s28, 32 }
 0x23a   : > { %p317_p7 = scmp.ne.s32.totalorder %s226_s28, %s316_s29  ;;  %p323_p10 = scmp.lt.s32.totalorder %s226_s28, %s226_s28 }
 0x23b   : > { %p324_p11 = scmp.lt.s32.totalorder %s322_s30, %s316_s29 }
 0x23c   : > { %p318_p8 = pnand %p317_p7, %p295_p6 }
 0x23d   : > { %p325_p12 = por %p324_p11, %p323_p10 }
 0x23e   : > { %p319_p9 = pneg %p318_p8 }
 0x240   : > { %p326_p13 = pnand %p325_p12, %p319_p9 }
 0x242   : > { %329 = shalt.err (!%p326_p13)
}
 0x243   : > { %s330_s6 = scalar_lea.hbm %s433_s3, 16 }
 0x244   : > { %p331_p0 = scmp.ne.s32.totalorder %s433_s3, %s330_s6  ;;  %p336_p3 = scmp.lt.u32.totalorder %s330_s6, %s433_s3 }
 0x246   : > { %p332_p1 = pnand %p331_p0, %p295_p6 }
 0x248   : > { %p333_p2 = pneg %p332_p1 }
 0x24a   : > { %p338_p4 = pnand %p336_p3, %p333_p2 }
 0x24c   : > { %341 = shalt.err (!%p338_p4)
}
 0x24d   : > { %292 = dma.vmem_to_hbm [thread:$0]  (%p295_p6), %s226_s28, 16, %s433_s3, [#allocation6]  }
 0x24e   : > { %347 = dma.done.wait (%p295_p6), [#allocation6], 16  }
 0x24f   : > { %349 = vsyncadd (%p295_p6), [#allocation6], 4294967280 }
 0x250 PF: > { %s15_s14 = sadd.s32 1, %s352_s14  }
 0x251   : > { %p12_p5 = scmp.ge.s32.totalorder %s15_s14, 5  }
 0x253   :  { %14 = sbr.rel (!%p12_p5) target bundleno = 3 (0x3), region = 66 }
 0x25a   :  { %238 = vsyncpa [#allocation6], 1 }
 0x25b   :  { %240 = vsyncpa [#allocation6 + $0x1], 1 }

</bundles_post_ra>
